<compile_context>
chip_gen: v5e
topology: v5e:2x2
jax: 0.10.0
libtpu: 0.0.40
codegen_flags: <defaults>
</compile_context>

<pallas_src>
import functools

import jax
import jax.numpy as jnp
from jax.experimental import pallas as pl
from jax.experimental.pallas import tpu as pltpu

HIDDEN = 32
NUM_LAYERS = 2
INPUT_SIZE = 1


def lstm_kernel(x_ref, wih0c_ref, biasc_ref, wc_ref, fcw_ref, fcb_ref, out_ref,
                *, seq_len, batch):
    """Whole-sequence skewed 2-layer LSTM + final Linear, all resident in VMEM.

    x_ref    : ((T+1)*B, 1) f32  time-major input, one zero-padded extra step
    wih0c_ref: (1, 8H)      f32  layer-0 input->gate weights in combined layout
                                  (layer-1 columns are zero)
    biasc_ref: (1, 8H)      f32  combined biases [b0 | b1] in combined layout
    wc_ref   : (2H, 8H)     bf16 fused recurrent weights [[whh0, wih1],[0, whh1]],
                                  gate columns interleaved [i0 i1 f0 f1 g0 g1 o0 o1]
    fcw_ref  : (1, H)       f32  final Linear weight
    fcb_ref  : (1, 1)       f32  final Linear bias
    out_ref  : (B, 1)       f32
    """
    T, B, H = seq_len, batch, HIDDEN
    G = 2 * H          # per-gate combined width: [layer0 | layer1]

    wc = wc_ref[...]                          # (2H, 8H) bf16 -> single-pass MXU
    wih0_c = wih0c_ref[...]                   # (1, 8H)
    bias_c = biasc_ref[...]                   # (1, 8H)

    # Hoisted layer-0 input projection + both layers' biases for all T+1 steps,
    # densely packed: ((T+1)*B, 8H) (full sublane occupancy, 2 lane tiles).
    gxb = x_ref[...] * wih0_c + bias_c        # ((T+1)*B, 8H) f32

    # keep-mask: ones over the layer-0 half, zeros over the layer-1 half.
    lane = jax.lax.broadcasted_iota(jnp.int32, (1, G), 1)
    keep_layer0 = (lane < H).astype(jnp.float32)

    def combined_cell(gates, c):
        # One sigmoid and one tanh over the full (B, 8H) gates serve both
        # layers' cells (extra lanes are computed but discarded).
        sg = jax.nn.sigmoid(gates)
        tg = jnp.tanh(gates)
        i = sg[:, 0 * G:1 * G]
        f = sg[:, 1 * G:2 * G]
        g = tg[:, 2 * G:3 * G]
        o = sg[:, 3 * G:4 * G]
        c_new = f * c + i * g                 # (B, 2H)
        h_new = o * jnp.tanh(c_new)           # (B, 2H)
        return h_new, c_new

    h = jnp.zeros((B, G), jnp.float32)        # [h1 | h2]
    c = jnp.zeros((B, G), jnp.float32)        # [c1 | c2]
    rec = jnp.zeros((B, 4 * G), jnp.float32)  # fused recurrent gate contribution

    # Skewed recurrence: iteration t advances layer 0 to step t and layer 1 to
    # step t-1 with a single fused matmul + a single combined cell.
    # T is a trace-time constant -> fully unrolled (LLO scheduling visibility).
    for t in range(T + 1):
        gates = gxb[t * B:(t + 1) * B, :] + rec       # single VPU add per step
        h, c = combined_cell(gates, c)
        if t == 0:
            # The layer-1 half of iteration 0 is a spurious "step -1": force
            # its state back to the zero initial state before it feeds step 0.
            h = h * keep_layer0
            c = c * keep_layer0
        if t < T:
            # One fused MXU push per step (bf16 operands, f32 accumulation):
            #   [rec0(t+1) | raw_gates1(t)] = [h1(t) | h2(t-1)] @ Wc
            rec = jnp.dot(h.astype(jnp.bfloat16), wc,
                          preferred_element_type=jnp.float32)

    # fc on the last timestep's top-layer hidden state h2 = h[:, H:2H].
    # (B,1) output is a masked store; negligible at this size.
    h2 = h[:, H:2 * H]
    out_ref[...] = (jnp.sum(h2 * fcw_ref[...], axis=-1, keepdims=True)
                    + fcb_ref[...])


def lstm_forward(x, params):
    """x: (B, T, 1) float32 -> (B, 1) float32."""
    B, T, I = x.shape
    assert I == INPUT_SIZE
    # Squeeze the size-1 feature dim, go time-major, append one zero-padded
    # step (consumed only by the discarded layer-0 half of the last skewed
    # iteration), and flatten densely to ((T+1)*B, 1).
    x_tb = jnp.transpose(x[..., 0], (1, 0)).astype(jnp.float32)           # (T, B)
    x_pad = jnp.concatenate([x_tb, jnp.zeros((1, B), jnp.float32)], 0)    # (T+1, B)
    x_flat = x_pad.reshape((T + 1) * B, 1)

    inputs = (x_flat,
              params["wih0_c"], params["bias_c"], params["wc_bf16"],
              params["fcw"], params["fcb"])

    vmem = lambda: pl.BlockSpec(memory_space=pltpu.MemorySpace.VMEM)
    kernel = functools.partial(lstm_kernel, seq_len=T, batch=B)
    return pl.pallas_call(
        kernel,
        out_shape=jax.ShapeDtypeStruct((B, 1), jnp.float32),
        in_specs=[vmem() for _ in inputs],
        out_specs=vmem(),
    )(*inputs)


def init_params(key, hidden=HIDDEN, input_size=INPUT_SIZE):
    """PyTorch-style init (uniform(-1/sqrt(H), 1/sqrt(H))) + host-side packing."""
    ks = jax.random.split(key, 10)
    H = hidden
    bound = 1.0 / jnp.sqrt(hidden)
    u = lambda k, shape: jax.random.uniform(k, shape, jnp.float32, -bound, bound)

    # layer 0
    w_ih0 = u(ks[0], (4 * H, input_size))     # (4H, I)
    w_hh0 = u(ks[1], (4 * H, H))              # (4H, H)
    b_ih0 = u(ks[2], (4 * H,))
    b_hh0 = u(ks[3], (4 * H,))
    # layer 1
    w_ih1 = u(ks[4], (4 * H, H))
    w_hh1 = u(ks[5], (4 * H, H))
    b_ih1 = u(ks[6], (4 * H,))
    b_hh1 = u(ks[7], (4 * H,))
    # fc
    fc_w = u(ks[8], (1, H))
    fc_b = u(ks[9], (1,))

    def interleave(m0, m1):
        # m0, m1: (R, 4H) gate-blocked [i|f|g|o] -> (R, 8H) [i0 i1 f0 f1 g0 g1 o0 o1]
        return jnp.concatenate(
            [m[:, k * H:(k + 1) * H] for k in range(4) for m in (m0, m1)], axis=1)

    whh0_t = w_hh0.T                          # (H, 4H)
    wih1_t = w_ih1.T                          # (H, 4H)
    whh1_t = w_hh1.T                          # (H, 4H)
    wih0_t = w_ih0.T                          # (I, 4H)
    b0 = (b_ih0 + b_hh0)[None, :]             # (1, 4H)
    b1 = (b_ih1 + b_hh1)[None, :]             # (1, 4H)

    # Fused recurrent weights: rows 0:H multiply h1, rows H:2H multiply h2.
    wc = jnp.concatenate(
        [interleave(whh0_t, wih1_t),
         interleave(jnp.zeros_like(whh1_t), whh1_t)], axis=0)   # (2H, 8H)

    return {
        "wc_bf16": wc.astype(jnp.bfloat16),                     # bf16 MXU operand
        "wih0_c": interleave(wih0_t, jnp.zeros_like(wih0_t)),   # (1, 8H)
        "bias_c": interleave(b0, b1),                           # (1, 8H)
        "fcw": fc_w,                                            # (1, H)
        "fcb": fc_b.reshape(1, 1),                              # (1, 1)
        # Raw (unpacked) params for the pure-JAX reference.
        "raw": dict(wih0=w_ih0, whh0=w_hh0, b0=b_ih0 + b_hh0,
                    wih1=w_ih1, whh1=w_hh1, b1=b_ih1 + b_hh1,
                    fcw=fc_w, fcb=fc_b),
    }


def lstm_reference(x, raw):
    """Pure-JAX f32 reference matching the PyTorch module semantics."""
    B, T, _ = x.shape
    H = HIDDEN
    h1 = c1 = h2 = c2 = jnp.zeros((B, H), jnp.float32)

    def cell(gates, c):
        i = jax.nn.sigmoid(gates[:, :H])
        f = jax.nn.sigmoid(gates[:, H:2 * H])
        g = jnp.tanh(gates[:, 2 * H:3 * H])
        o = jax.nn.sigmoid(gates[:, 3 * H:])
        c = f * c + i * g
        return o * jnp.tanh(c), c

    for t in range(T):
        xt = x[:, t, :]                                         # (B, 1)
        g0 = xt @ raw["wih0"].T + h1 @ raw["whh0"].T + raw["b0"]
        h1, c1 = cell(g0, c1)
        g1 = h1 @ raw["wih1"].T + h2 @ raw["whh1"].T + raw["b1"]
        h2, c2 = cell(g1, c2)
    return h2 @ raw["fcw"].T + raw["fcb"]


if __name__ == "__main__":
    key = jax.random.PRNGKey(0)
    k_x, k_p = jax.random.split(key)

    B, T, I = 2, 8, INPUT_SIZE
    x = jax.random.normal(k_x, (B, T, I), jnp.float32)          # (batch, seq, input)

    params = init_params(k_p)

    out = lstm_forward(x, params)
    out = jax.block_until_ready(out)

    ref = lstm_reference(x, params["raw"])
    assert out.shape == (B, 1), out.shape
    # bf16 MXU operands over 8 recurrent steps -> slightly looser tolerance
    # than pure-f32 parity.
    assert jnp.allclose(out, ref, atol=2e-2, rtol=2e-2), (out, ref)

    print("KERNEL_OK")
</pallas_src>

<mosaic_0001>
module attributes {stable_mosaic.version = 11 : i64} {
  func.func @lstm_kernel(%arg0: memref<18x1xf32, #tpu.memory_space<vmem>>, %arg1: memref<1x256xf32, #tpu.memory_space<vmem>>, %arg2: memref<1x256xf32, #tpu.memory_space<vmem>>, %arg3: memref<64x256xbf16, #tpu.memory_space<vmem>>, %arg4: memref<1x32xf32, #tpu.memory_space<vmem>>, %arg5: memref<1x1xf32, #tpu.memory_space<vmem>>, %arg6: memref<2x1xf32, #tpu.memory_space<vmem>>) attributes {dimension_semantics = [], scalar_prefetch = 0 : i64, scratch_operands = 0 : i64, tpu.core_type = #tpu.core_type<tc>} {
    %c0 = arith.constant 0 : index
    %c0_0 = arith.constant 0 : index
    %0 = vector.load %arg3[%c0, %c0_0] : memref<64x256xbf16, #tpu.memory_space<vmem>>, vector<64x256xbf16>
    %c0_1 = arith.constant 0 : index
    %c0_2 = arith.constant 0 : index
    %1 = vector.load %arg1[%c0_1, %c0_2] : memref<1x256xf32, #tpu.memory_space<vmem>>, vector<1x256xf32>
    %c0_3 = arith.constant 0 : index
    %c0_4 = arith.constant 0 : index
    %2 = vector.load %arg2[%c0_3, %c0_4] : memref<1x256xf32, #tpu.memory_space<vmem>>, vector<1x256xf32>
    %c0_5 = arith.constant 0 : index
    %c0_6 = arith.constant 0 : index
    %3 = vector.load %arg0[%c0_5, %c0_6] : memref<18x1xf32, #tpu.memory_space<vmem>>, vector<18x1xf32>
    %4 = vector.broadcast %3 : vector<18x1xf32> to vector<18x256xf32>
    %5 = vector.broadcast %1 : vector<1x256xf32> to vector<18x256xf32>
    %6 = arith.mulf %4, %5 : vector<18x256xf32>
    %7 = vector.broadcast %2 : vector<1x256xf32> to vector<18x256xf32>
    %8 = arith.addf %6, %7 : vector<18x256xf32>
    %9 = tpu.iota {dimensions = array<i32: 1>} : vector<1x64xi32>
    %c32_i32 = arith.constant 32 : i32
    %10 = vector.broadcast %c32_i32 : i32 to vector<1x64xi32>
    %11 = arith.cmpi slt, %9, %10 : vector<1x64xi32>
    %12 = arith.extui %11 : vector<1x64xi1> to vector<1x64xi32>
    %13 = arith.sitofp %12 : vector<1x64xi32> to vector<1x64xf32>
    %cst = arith.constant 0.000000e+00 : f32
    %14 = vector.broadcast %cst : f32 to vector<2x64xf32>
    %cst_7 = arith.constant 0.000000e+00 : f32
    %15 = vector.broadcast %cst_7 : f32 to vector<2x256xf32>
    %16 = vector.extract_strided_slice %8 {offsets = [0, 0], sizes = [2, 256], strides = [1, 1]} : vector<18x256xf32> to vector<2x256xf32>
    %17 = arith.addf %16, %15 : vector<2x256xf32>
    %18 = arith.negf %17 : vector<2x256xf32>
    %19 = math.exp %18 : vector<2x256xf32>
    %cst_8 = arith.constant 1.000000e+00 : f32
    %20 = vector.broadcast %cst_8 : f32 to vector<2x256xf32>
    %21 = arith.addf %20, %19 : vector<2x256xf32>
    %22 = arith.divf %20, %21 : vector<2x256xf32>
    %23 = math.tanh %17 : vector<2x256xf32>
    %24 = vector.extract_strided_slice %22 {offsets = [0, 0], sizes = [2, 64], strides = [1, 1]} : vector<2x256xf32> to vector<2x64xf32>
    %25 = vector.extract_strided_slice %22 {offsets = [0, 64], sizes = [2, 64], strides = [1, 1]} : vector<2x256xf32> to vector<2x64xf32>
    %26 = vector.extract_strided_slice %23 {offsets = [0, 128], sizes = [2, 64], strides = [1, 1]} : vector<2x256xf32> to vector<2x64xf32>
    %27 = vector.extract_strided_slice %22 {offsets = [0, 192], sizes = [2, 64], strides = [1, 1]} : vector<2x256xf32> to vector<2x64xf32>
    %28 = arith.mulf %25, %14 : vector<2x64xf32>
    %29 = arith.mulf %24, %26 : vector<2x64xf32>
    %30 = arith.addf %28, %29 : vector<2x64xf32>
    %31 = math.tanh %30 : vector<2x64xf32>
    %32 = arith.mulf %27, %31 : vector<2x64xf32>
    %33 = vector.broadcast %13 : vector<1x64xf32> to vector<2x64xf32>
    %34 = arith.mulf %32, %33 : vector<2x64xf32>
    %35 = vector.broadcast %13 : vector<1x64xf32> to vector<2x64xf32>
    %36 = arith.mulf %30, %35 : vector<2x64xf32>
    %37 = arith.truncf %34 : vector<2x64xf32> to vector<2x64xbf16>
    %cst_9 = arith.constant dense<0.000000e+00> : vector<2x256xf32>
    %38 = tpu.matmul %37, %0, %cst_9 {dimension_numbers = #tpu.dot_dimension_numbers<[1], [0], [0], [1], [0, 0, 1, 1], [], []>} : vector<2x64xbf16>, vector<64x256xbf16>, vector<2x256xf32> -> vector<2x256xf32>
    %39 = vector.extract_strided_slice %8 {offsets = [2, 0], sizes = [2, 256], strides = [1, 1]} : vector<18x256xf32> to vector<2x256xf32>
    %40 = arith.addf %39, %38 : vector<2x256xf32>
    %41 = arith.negf %40 : vector<2x256xf32>
    %42 = math.exp %41 : vector<2x256xf32>
    %cst_10 = arith.constant 1.000000e+00 : f32
    %43 = vector.broadcast %cst_10 : f32 to vector<2x256xf32>
    %44 = arith.addf %43, %42 : vector<2x256xf32>
    %45 = arith.divf %43, %44 : vector<2x256xf32>
    %46 = math.tanh %40 : vector<2x256xf32>
    %47 = vector.extract_strided_slice %45 {offsets = [0, 0], sizes = [2, 64], strides = [1, 1]} : vector<2x256xf32> to vector<2x64xf32>
    %48 = vector.extract_strided_slice %45 {offsets = [0, 64], sizes = [2, 64], strides = [1, 1]} : vector<2x256xf32> to vector<2x64xf32>
    %49 = vector.extract_strided_slice %46 {offsets = [0, 128], sizes = [2, 64], strides = [1, 1]} : vector<2x256xf32> to vector<2x64xf32>
    %50 = vector.extract_strided_slice %45 {offsets = [0, 192], sizes = [2, 64], strides = [1, 1]} : vector<2x256xf32> to vector<2x64xf32>
    %51 = arith.mulf %48, %36 : vector<2x64xf32>
    %52 = arith.mulf %47, %49 : vector<2x64xf32>
    %53 = arith.addf %51, %52 : vector<2x64xf32>
    %54 = math.tanh %53 : vector<2x64xf32>
    %55 = arith.mulf %50, %54 : vector<2x64xf32>
    %56 = arith.truncf %55 : vector<2x64xf32> to vector<2x64xbf16>
    %cst_11 = arith.constant dense<0.000000e+00> : vector<2x256xf32>
    %57 = tpu.matmul %56, %0, %cst_11 {dimension_numbers = #tpu.dot_dimension_numbers<[1], [0], [0], [1], [0, 0, 1, 1], [], []>} : vector<2x64xbf16>, vector<64x256xbf16>, vector<2x256xf32> -> vector<2x256xf32>
    %58 = vector.extract_strided_slice %8 {offsets = [4, 0], sizes = [2, 256], strides = [1, 1]} : vector<18x256xf32> to vector<2x256xf32>
    %59 = arith.addf %58, %57 : vector<2x256xf32>
    %60 = arith.negf %59 : vector<2x256xf32>
    %61 = math.exp %60 : vector<2x256xf32>
    %cst_12 = arith.constant 1.000000e+00 : f32
    %62 = vector.broadcast %cst_12 : f32 to vector<2x256xf32>
    %63 = arith.addf %62, %61 : vector<2x256xf32>
    %64 = arith.divf %62, %63 : vector<2x256xf32>
    %65 = math.tanh %59 : vector<2x256xf32>
    %66 = vector.extract_strided_slice %64 {offsets = [0, 0], sizes = [2, 64], strides = [1, 1]} : vector<2x256xf32> to vector<2x64xf32>
    %67 = vector.extract_strided_slice %64 {offsets = [0, 64], sizes = [2, 64], strides = [1, 1]} : vector<2x256xf32> to vector<2x64xf32>
    %68 = vector.extract_strided_slice %65 {offsets = [0, 128], sizes = [2, 64], strides = [1, 1]} : vector<2x256xf32> to vector<2x64xf32>
    %69 = vector.extract_strided_slice %64 {offsets = [0, 192], sizes = [2, 64], strides = [1, 1]} : vector<2x256xf32> to vector<2x64xf32>
    %70 = arith.mulf %67, %53 : vector<2x64xf32>
    %71 = arith.mulf %66, %68 : vector<2x64xf32>
    %72 = arith.addf %70, %71 : vector<2x64xf32>
    %73 = math.tanh %72 : vector<2x64xf32>
    %74 = arith.mulf %69, %73 : vector<2x64xf32>
    %75 = arith.truncf %74 : vector<2x64xf32> to vector<2x64xbf16>
    %cst_13 = arith.constant dense<0.000000e+00> : vector<2x256xf32>
    %76 = tpu.matmul %75, %0, %cst_13 {dimension_numbers = #tpu.dot_dimension_numbers<[1], [0], [0], [1], [0, 0, 1, 1], [], []>} : vector<2x64xbf16>, vector<64x256xbf16>, vector<2x256xf32> -> vector<2x256xf32>
    %77 = vector.extract_strided_slice %8 {offsets = [6, 0], sizes = [2, 256], strides = [1, 1]} : vector<18x256xf32> to vector<2x256xf32>
    %78 = arith.addf %77, %76 : vector<2x256xf32>
    %79 = arith.negf %78 : vector<2x256xf32>
    %80 = math.exp %79 : vector<2x256xf32>
    %cst_14 = arith.constant 1.000000e+00 : f32
    %81 = vector.broadcast %cst_14 : f32 to vector<2x256xf32>
    %82 = arith.addf %81, %80 : vector<2x256xf32>
    %83 = arith.divf %81, %82 : vector<2x256xf32>
    %84 = math.tanh %78 : vector<2x256xf32>
    %85 = vector.extract_strided_slice %83 {offsets = [0, 0], sizes = [2, 64], strides = [1, 1]} : vector<2x256xf32> to vector<2x64xf32>
    %86 = vector.extract_strided_slice %83 {offsets = [0, 64], sizes = [2, 64], strides = [1, 1]} : vector<2x256xf32> to vector<2x64xf32>
    %87 = vector.extract_strided_slice %84 {offsets = [0, 128], sizes = [2, 64], strides = [1, 1]} : vector<2x256xf32> to vector<2x64xf32>
    %88 = vector.extract_strided_slice %83 {offsets = [0, 192], sizes = [2, 64], strides = [1, 1]} : vector<2x256xf32> to vector<2x64xf32>
    %89 = arith.mulf %86, %72 : vector<2x64xf32>
    %90 = arith.mulf %85, %87 : vector<2x64xf32>
    %91 = arith.addf %89, %90 : vector<2x64xf32>
    %92 = math.tanh %91 : vector<2x64xf32>
    %93 = arith.mulf %88, %92 : vector<2x64xf32>
    %94 = arith.truncf %93 : vector<2x64xf32> to vector<2x64xbf16>
    %cst_15 = arith.constant dense<0.000000e+00> : vector<2x256xf32>
    %95 = tpu.matmul %94, %0, %cst_15 {dimension_numbers = #tpu.dot_dimension_numbers<[1], [0], [0], [1], [0, 0, 1, 1], [], []>} : vector<2x64xbf16>, vector<64x256xbf16>, vector<2x256xf32> -> vector<2x256xf32>
    %96 = vector.extract_strided_slice %8 {offsets = [8, 0], sizes = [2, 256], strides = [1, 1]} : vector<18x256xf32> to vector<2x256xf32>
    %97 = arith.addf %96, %95 : vector<2x256xf32>
    %98 = arith.negf %97 : vector<2x256xf32>
    %99 = math.exp %98 : vector<2x256xf32>
    %cst_16 = arith.constant 1.000000e+00 : f32
    %100 = vector.broadcast %cst_16 : f32 to vector<2x256xf32>
    %101 = arith.addf %100, %99 : vector<2x256xf32>
    %102 = arith.divf %100, %101 : vector<2x256xf32>
    %103 = math.tanh %97 : vector<2x256xf32>
    %104 = vector.extract_strided_slice %102 {offsets = [0, 0], sizes = [2, 64], strides = [1, 1]} : vector<2x256xf32> to vector<2x64xf32>
    %105 = vector.extract_strided_slice %102 {offsets = [0, 64], sizes = [2, 64], strides = [1, 1]} : vector<2x256xf32> to vector<2x64xf32>
    %106 = vector.extract_strided_slice %103 {offsets = [0, 128], sizes = [2, 64], strides = [1, 1]} : vector<2x256xf32> to vector<2x64xf32>
    %107 = vector.extract_strided_slice %102 {offsets = [0, 192], sizes = [2, 64], strides = [1, 1]} : vector<2x256xf32> to vector<2x64xf32>
    %108 = arith.mulf %105, %91 : vector<2x64xf32>
    %109 = arith.mulf %104, %106 : vector<2x64xf32>
    %110 = arith.addf %108, %109 : vector<2x64xf32>
    %111 = math.tanh %110 : vector<2x64xf32>
    %112 = arith.mulf %107, %111 : vector<2x64xf32>
    %113 = arith.truncf %112 : vector<2x64xf32> to vector<2x64xbf16>
    %cst_17 = arith.constant dense<0.000000e+00> : vector<2x256xf32>
    %114 = tpu.matmul %113, %0, %cst_17 {dimension_numbers = #tpu.dot_dimension_numbers<[1], [0], [0], [1], [0, 0, 1, 1], [], []>} : vector<2x64xbf16>, vector<64x256xbf16>, vector<2x256xf32> -> vector<2x256xf32>
    %115 = vector.extract_strided_slice %8 {offsets = [10, 0], sizes = [2, 256], strides = [1, 1]} : vector<18x256xf32> to vector<2x256xf32>
    %116 = arith.addf %115, %114 : vector<2x256xf32>
    %117 = arith.negf %116 : vector<2x256xf32>
    %118 = math.exp %117 : vector<2x256xf32>
    %cst_18 = arith.constant 1.000000e+00 : f32
    %119 = vector.broadcast %cst_18 : f32 to vector<2x256xf32>
    %120 = arith.addf %119, %118 : vector<2x256xf32>
    %121 = arith.divf %119, %120 : vector<2x256xf32>
    %122 = math.tanh %116 : vector<2x256xf32>
    %123 = vector.extract_strided_slice %121 {offsets = [0, 0], sizes = [2, 64], strides = [1, 1]} : vector<2x256xf32> to vector<2x64xf32>
    %124 = vector.extract_strided_slice %121 {offsets = [0, 64], sizes = [2, 64], strides = [1, 1]} : vector<2x256xf32> to vector<2x64xf32>
    %125 = vector.extract_strided_slice %122 {offsets = [0, 128], sizes = [2, 64], strides = [1, 1]} : vector<2x256xf32> to vector<2x64xf32>
    %126 = vector.extract_strided_slice %121 {offsets = [0, 192], sizes = [2, 64], strides = [1, 1]} : vector<2x256xf32> to vector<2x64xf32>
    %127 = arith.mulf %124, %110 : vector<2x64xf32>
    %128 = arith.mulf %123, %125 : vector<2x64xf32>
    %129 = arith.addf %127, %128 : vector<2x64xf32>
    %130 = math.tanh %129 : vector<2x64xf32>
    %131 = arith.mulf %126, %130 : vector<2x64xf32>
    %132 = arith.truncf %131 : vector<2x64xf32> to vector<2x64xbf16>
    %cst_19 = arith.constant dense<0.000000e+00> : vector<2x256xf32>
    %133 = tpu.matmul %132, %0, %cst_19 {dimension_numbers = #tpu.dot_dimension_numbers<[1], [0], [0], [1], [0, 0, 1, 1], [], []>} : vector<2x64xbf16>, vector<64x256xbf16>, vector<2x256xf32> -> vector<2x256xf32>
    %134 = vector.extract_strided_slice %8 {offsets = [12, 0], sizes = [2, 256], strides = [1, 1]} : vector<18x256xf32> to vector<2x256xf32>
    %135 = arith.addf %134, %133 : vector<2x256xf32>
    %136 = arith.negf %135 : vector<2x256xf32>
    %137 = math.exp %136 : vector<2x256xf32>
    %cst_20 = arith.constant 1.000000e+00 : f32
    %138 = vector.broadcast %cst_20 : f32 to vector<2x256xf32>
    %139 = arith.addf %138, %137 : vector<2x256xf32>
    %140 = arith.divf %138, %139 : vector<2x256xf32>
    %141 = math.tanh %135 : vector<2x256xf32>
    %142 = vector.extract_strided_slice %140 {offsets = [0, 0], sizes = [2, 64], strides = [1, 1]} : vector<2x256xf32> to vector<2x64xf32>
    %143 = vector.extract_strided_slice %140 {offsets = [0, 64], sizes = [2, 64], strides = [1, 1]} : vector<2x256xf32> to vector<2x64xf32>
    %144 = vector.extract_strided_slice %141 {offsets = [0, 128], sizes = [2, 64], strides = [1, 1]} : vector<2x256xf32> to vector<2x64xf32>
    %145 = vector.extract_strided_slice %140 {offsets = [0, 192], sizes = [2, 64], strides = [1, 1]} : vector<2x256xf32> to vector<2x64xf32>
    %146 = arith.mulf %143, %129 : vector<2x64xf32>
    %147 = arith.mulf %142, %144 : vector<2x64xf32>
    %148 = arith.addf %146, %147 : vector<2x64xf32>
    %149 = math.tanh %148 : vector<2x64xf32>
    %150 = arith.mulf %145, %149 : vector<2x64xf32>
    %151 = arith.truncf %150 : vector<2x64xf32> to vector<2x64xbf16>
    %cst_21 = arith.constant dense<0.000000e+00> : vector<2x256xf32>
    %152 = tpu.matmul %151, %0, %cst_21 {dimension_numbers = #tpu.dot_dimension_numbers<[1], [0], [0], [1], [0, 0, 1, 1], [], []>} : vector<2x64xbf16>, vector<64x256xbf16>, vector<2x256xf32> -> vector<2x256xf32>
    %153 = vector.extract_strided_slice %8 {offsets = [14, 0], sizes = [2, 256], strides = [1, 1]} : vector<18x256xf32> to vector<2x256xf32>
    %154 = arith.addf %153, %152 : vector<2x256xf32>
    %155 = arith.negf %154 : vector<2x256xf32>
    %156 = math.exp %155 : vector<2x256xf32>
    %cst_22 = arith.constant 1.000000e+00 : f32
    %157 = vector.broadcast %cst_22 : f32 to vector<2x256xf32>
    %158 = arith.addf %157, %156 : vector<2x256xf32>
    %159 = arith.divf %157, %158 : vector<2x256xf32>
    %160 = math.tanh %154 : vector<2x256xf32>
    %161 = vector.extract_strided_slice %159 {offsets = [0, 0], sizes = [2, 64], strides = [1, 1]} : vector<2x256xf32> to vector<2x64xf32>
    %162 = vector.extract_strided_slice %159 {offsets = [0, 64], sizes = [2, 64], strides = [1, 1]} : vector<2x256xf32> to vector<2x64xf32>
    %163 = vector.extract_strided_slice %160 {offsets = [0, 128], sizes = [2, 64], strides = [1, 1]} : vector<2x256xf32> to vector<2x64xf32>
    %164 = vector.extract_strided_slice %159 {offsets = [0, 192], sizes = [2, 64], strides = [1, 1]} : vector<2x256xf32> to vector<2x64xf32>
    %165 = arith.mulf %162, %148 : vector<2x64xf32>
    %166 = arith.mulf %161, %163 : vector<2x64xf32>
    %167 = arith.addf %165, %166 : vector<2x64xf32>
    %168 = math.tanh %167 : vector<2x64xf32>
    %169 = arith.mulf %164, %168 : vector<2x64xf32>
    %170 = arith.truncf %169 : vector<2x64xf32> to vector<2x64xbf16>
    %cst_23 = arith.constant dense<0.000000e+00> : vector<2x256xf32>
    %171 = tpu.matmul %170, %0, %cst_23 {dimension_numbers = #tpu.dot_dimension_numbers<[1], [0], [0], [1], [0, 0, 1, 1], [], []>} : vector<2x64xbf16>, vector<64x256xbf16>, vector<2x256xf32> -> vector<2x256xf32>
    %172 = vector.extract_strided_slice %8 {offsets = [16, 0], sizes = [2, 256], strides = [1, 1]} : vector<18x256xf32> to vector<2x256xf32>
    %173 = arith.addf %172, %171 : vector<2x256xf32>
    %174 = arith.negf %173 : vector<2x256xf32>
    %175 = math.exp %174 : vector<2x256xf32>
    %cst_24 = arith.constant 1.000000e+00 : f32
    %176 = vector.broadcast %cst_24 : f32 to vector<2x256xf32>
    %177 = arith.addf %176, %175 : vector<2x256xf32>
    %178 = arith.divf %176, %177 : vector<2x256xf32>
    %179 = math.tanh %173 : vector<2x256xf32>
    %180 = vector.extract_strided_slice %178 {offsets = [0, 0], sizes = [2, 64], strides = [1, 1]} : vector<2x256xf32> to vector<2x64xf32>
    %181 = vector.extract_strided_slice %178 {offsets = [0, 64], sizes = [2, 64], strides = [1, 1]} : vector<2x256xf32> to vector<2x64xf32>
    %182 = vector.extract_strided_slice %179 {offsets = [0, 128], sizes = [2, 64], strides = [1, 1]} : vector<2x256xf32> to vector<2x64xf32>
    %183 = vector.extract_strided_slice %178 {offsets = [0, 192], sizes = [2, 64], strides = [1, 1]} : vector<2x256xf32> to vector<2x64xf32>
    %184 = arith.mulf %181, %167 : vector<2x64xf32>
    %185 = arith.mulf %180, %182 : vector<2x64xf32>
    %186 = arith.addf %184, %185 : vector<2x64xf32>
    %187 = math.tanh %186 : vector<2x64xf32>
    %188 = arith.mulf %183, %187 : vector<2x64xf32>
    %189 = vector.extract_strided_slice %188 {offsets = [0, 32], sizes = [2, 32], strides = [1, 1]} : vector<2x64xf32> to vector<2x32xf32>
    %c0_25 = arith.constant 0 : index
    %c0_26 = arith.constant 0 : index
    %190 = vector.load %arg4[%c0_25, %c0_26] : memref<1x32xf32, #tpu.memory_space<vmem>>, vector<1x32xf32>
    %191 = vector.broadcast %190 : vector<1x32xf32> to vector<2x32xf32>
    %192 = arith.mulf %189, %191 : vector<2x32xf32>
    %cst_27 = arith.constant dense<0.000000e+00> : vector<2xf32>
    %193 = vector.multi_reduction <add>, %192, %cst_27 [1] : vector<2x32xf32> to vector<2xf32>
    %194 = vector.shape_cast %193 : vector<2xf32> to vector<2x1xf32>
    %c0_28 = arith.constant 0 : index
    %c0_29 = arith.constant 0 : index
    %195 = vector.load %arg5[%c0_28, %c0_29] : memref<1x1xf32, #tpu.memory_space<vmem>>, vector<1x1xf32>
    %196 = vector.broadcast %195 : vector<1x1xf32> to vector<2x1xf32>
    %197 = arith.addf %194, %196 : vector<2x1xf32>
    %c0_30 = arith.constant 0 : index
    %c0_31 = arith.constant 0 : index
    %198 = vector.load %arg6[%c0_30, %c0_31] : memref<2x1xf32, #tpu.memory_space<vmem>>, vector<2x1xf32>
    tpu.vector_store %arg6[%c0_30, %c0_31], %197 {strides = array<i32>} : memref<2x1xf32, #tpu.memory_space<vmem>>, vector<2x1xf32>,
    return
  }
}

</mosaic_0001>

<bundles_post_ra>
// kernel: tpu_custom_call.1
= control target key start
LH: loop header
LB: loop body
LE: loop exit
PB: predicated region body
PF: predicated region fallthrough
CT: control target
= control target key end

     0   :  { %s1416_s0 = inlined_call_operand.vmem [shape: f32[18,1], index: 0, kind: input, shape index: {}]   ;;  %s1417_s1 = inlined_call_operand.vmem [shape: f32[1,256], index: 1, kind: input, shape index: {}]   ;;  %s1418_s2 = inlined_call_operand.vmem [shape: f32[1,256], index: 2, kind: input, shape index: {}]   ;;  %s1419_s3 = inlined_call_operand.hbm [shape: bf16[64,256], index: 3, kind: input, shape index: {}]   ;;  %s1420_s4 = inlined_call_operand.vmem [shape: f32[1,32], index: 4, kind: input, shape index: {}]   ;;  %s1421_s5 = inlined_call_operand.<no memory space> [shape: f32[1,1], index: 5, kind: input, shape index: {}]   ;;  %s1422_s6 = inlined_call_operand.vmem [shape: f32[2,1], index: 6, kind: output, shape index: {}]  }
   0x1   :  { %v11_v0 = vstv %s1421_s5 }
   0x2   :  { %12 = vst [vmem:[#allocation2] sm:$0x1] %v11_v0 }
   0x3   :  { %13 = vsyncpa [#allocation4], 0  ;;  %s24_s25 = sshll.u32 %s1419_s3, 4  ;;  %s1172_s26 = smov [#allocation3]   ;;  %s25_s25 = int_to_ptr.hbm [resolvable:$true] %s24_s25 }
   0x4   :  { %s26_s27 = sshll.u32 %s1172_s26, 4  ;;  %s1173_s28 = smov 128   ;;  %s27_s27 = int_to_ptr.vmem [resolvable:$true] %s26_s27 }
   0x5   :  { %s1174_s29 = smov 8  }
   0x6   :  { %32 = dma.hbm_to_vmem [thread:$0]  %s25_s25, 1024, %s27_s27, [#allocation4], %s1173_s28, %s1173_s28, %s1174_s29  }
   0x7   :  { %1170 = dma.done.wait [#allocation4], 1024  }
   0x8   :  { %1171 = vsyncadd [#allocation4], 4294966272  ;;  %v1175_v1 = vmov 0   ;;  %v52_v2 = vld [vmem:[%s1416_s0] sm:$0xff]  ;;  %v92_v8 = vlaneseq  ;;  %v1176_v13 = vmov 0.0   ;;  %vm197_vm9 = vcmask 523264  }
   0x9   :  { %1034 = vset.pattern.permute.xlu0 %v1175_v1  ;;  %1035 = vset.pattern.permute.xlu1 %v1175_v1  ;;  %v50_v3 = vld [vmem:[%s1417_s1] sm:$0x3]  ;;  %s1177_s1 = smov 64   ;;  %v980_v36 = vld [vmem:[#allocation3 + $0x30] sm:$0xf]  ;;  %s1178_s14 = smov 96  }
   0xa   :  { %57 = vperm.xlu0 %1034, %v52_v2   ;;  %v51_v4 = vld [vmem:[%s1418_s2] sm:$0x3]  ;;  %v1230_v5 = vperm.slane %v50_v3, 0  ;;  %v93_v10 = vand.u32 127, %v92_v8  ;;  %v1240_v16 = vperm.slane %v50_v3, 1 }
   0xb   :  { %v1232_v6 = vperm.slane %v51_v4, 0  ;;  %v1243_v19 = vperm.slane %v51_v4, 1  ;;  %v1025_v37 = vld [vmem:[#allocation3 + $0x34] sm:$0xf0]  ;;  %v1024_v38 = vld [vmem:[#allocation3 + $0x34] sm:$0xf] }
   0xc   :  { %vm94_vm0 = vcmp.lt.s32.totalorder %v93_v10, 32  ;;  %v1254_v39 = vor.u32 %v1025_v37, %v980_v36  ;;  %v982_v40 = vld [vmem:[#allocation3 + $0x38] sm:$0xf0]  ;;  %v972_v41 = vld [vmem:[#allocation3 + $0x20] sm:$0xf] }
   0xd   :  { %v951_v14 = vsel %vm94_vm0, 1.0, %v1176_v13  ;;  %v1023_v42 = vld [vmem:[#allocation3 + $0x24] sm:$0xf0]  ;;  %v1256_v43 = vor.u32 %v1024_v38, %v982_v40  ;;  %v1022_v44 = vld [vmem:[#allocation3 + $0x24] sm:$0xf] }
   0xe   :  { %148 = vrot.lane.b32.xlu1 %v951_v14, %s1177_s1  ;;  %v974_v45 = vld [vmem:[#allocation3 + $0x28] sm:$0xf0]  ;;  %205 = vmatpush.bf16.msra.mxu0 %v1254_v39  ;;  %v1259_v47 = vor.u32 %v1023_v42, %v972_v41  ;;  %v964_v49 = vld [vmem:[#allocation3 + $0x10] sm:$0xf]  ;;  %v1021_v50 = vld [vmem:[#allocation3 + $0x14] sm:$0xf0] }
   0xf   :  { %298 = vmatpush.bf16.msra.mxu2 %v1254_v39  ;;  %218 = vmatpush.bf16.msra.mxu1 %v1256_v43  ;;  %v1263_v48 = vor.u32 %v1022_v44, %v974_v45  ;;  %v1020_v51 = vld [vmem:[#allocation3 + $0x14] sm:$0xf]  ;;  %v966_v52 = vld [vmem:[#allocation3 + $0x18] sm:$0xf0]  ;;  %v1268_v54 = vor.u32 %v1021_v50, %v964_v49  ;;  %v956_v56 = vld [vmem:[#allocation3] sm:$0xf] }
  0x10   :  { %311 = vmatpush.bf16.msra.mxu3 %v1256_v43  ;;  %v1272_v55 = vor.u32 %v1020_v51, %v966_v52  ;;  %v1019_v57 = vld [vmem:[#allocation3 + $0x4] sm:$0xf0]  ;;  %v1018_v58 = vld [vmem:[#allocation3 + $0x4] sm:$0xf]  ;;  %v958_v59 = vld [vmem:[#allocation3 + $0x8] sm:$0xf0] }
  0x11   :  { %v1276_v61 = vor.u32 %v1019_v57, %v956_v56  ;;  %v1280_v62 = vor.u32 %v1018_v58, %v958_v59 }
  0x12   :  { %206 = vmatpush.bf16.msra.mxu0 %v1259_v47 }
  0x13   :  { %299 = vmatpush.bf16.msra.mxu2 %v1259_v47  ;;  %219 = vmatpush.bf16.msra.mxu1 %v1263_v48 }
  0x14   :  { %312 = vmatpush.bf16.msra.mxu3 %v1263_v48 }
  0x16   :  { %207 = vmatpush.bf16.msra.mxu0 %v1268_v54 }
  0x17   :  { %300 = vmatpush.bf16.msra.mxu2 %v1268_v54  ;;  %220 = vmatpush.bf16.msra.mxu1 %v1272_v55 }
  0x18   :  { %313 = vmatpush.bf16.msra.mxu3 %v1272_v55 }
  0x1a   :  { %208 = vmatpush.bf16.msra.mxu0 %v1276_v61 }
  0x1b   :  { %301 = vmatpush.bf16.msra.mxu2 %v1276_v61  ;;  %221 = vmatpush.bf16.msra.mxu1 %v1280_v62 }
  0x1c   :  { %314 = vmatpush.bf16.msra.mxu3 %v1280_v62 }
  0x1e   :  { %391 = vmatpush.bf16.msrb.mxu0 %v1254_v39 }
  0x1f   :  { %404 = vmatpush.bf16.msrb.mxu1 %v1256_v43  ;;  %484 = vmatpush.bf16.msrb.mxu2 %v1254_v39 }
  0x20   :  { %497 = vmatpush.bf16.msrb.mxu3 %v1256_v43 }
  0x22   :  { %392 = vmatpush.bf16.msrb.mxu0 %v1259_v47 }
  0x23   :  { %405 = vmatpush.bf16.msrb.mxu1 %v1263_v48  ;;  %485 = vmatpush.bf16.msrb.mxu2 %v1259_v47 }
  0x24   :  { %498 = vmatpush.bf16.msrb.mxu3 %v1263_v48 }
  0x26   :  { %393 = vmatpush.bf16.msrb.mxu0 %v1268_v54 }
  0x27   :  { %406 = vmatpush.bf16.msrb.mxu1 %v1272_v55  ;;  %486 = vmatpush.bf16.msrb.mxu2 %v1268_v54 }
  0x28   :  { %499 = vmatpush.bf16.msrb.mxu3 %v1272_v55 }
  0x2a   :  { %394 = vmatpush.bf16.msrb.mxu0 %v1276_v61 }
  0x2b   :  { %407 = vmatpush.bf16.msrb.mxu1 %v1280_v62  ;;  %487 = vmatpush.bf16.msrb.mxu2 %v1276_v61 }
  0x2c   :  { %500 = vmatpush.bf16.msrb.mxu3 %v1280_v62 }
  0x7c   :  { %v58_v7 = vpop.permute.xlu0 %57 }
  0x7d   :  { %v75_v9 = vmul.f32 %v1230_v5, %v58_v7  ;;  %v76_v18 = vmul.f32 %v1240_v16, %v58_v7 }
  0x7f   :  { %v1236_v11 = vadd.f32 %v1232_v6, %v75_v9  ;;  %v1246_v21 = vadd.f32 %v1243_v19, %v76_v18 }
  0x80   :  { %v149_v14 = vpop.permute.xlu1 %148 }
  0x81   :  { %v952_v12 = vmul.f32 -1.442695, %v1236_v11  ;;  %v953_v33 = vmul.f32 -1.442695, %v1246_v21 }
  0x83   :  { %1038 = vpow2.f32 %v952_v12 }
  0x89   :  { %v1039_v15 = vpop.eup %1038 }
  0x8a   :  { %v105_v17 = vadd.f32 1.0, %v1039_v15 }
  0x8c   :  { %1040 = vrcp.f32 %v105_v17  ;;  %v118_v24 = vand.u32 2147483648, %v105_v17  ;;  %v116_v26 = vand.u32 2147483647, %v105_v17  ;;  %vm112_vm2 = vweird.f32 %v105_v17 }
  0x8d   :  { %1042 = vtanh.f32 %v1246_v21 }
  0x8e   :  { %v119_v28 = vor.u32 1.1754944e-38, %v118_v24  ;;  %vm117_vm4 = vcmp.eq.f32.partialorder %v116_v26, 8.507059e+37  ;;  %1044 = vpow2.f32 %v953_v33 }
  0x92   :  { %v1041_v20 = vpop.eup %1040 }
  0x93   :  { %v108_v22 = vmul.f32 %v1041_v20, %v105_v17  ;;  %vm113_vm1 = vweird.f32 %v1041_v20  ;;  %v1043_v30 = vpop.eup %1042 }
  0x94   :  { %vm114_vm3 = vmor %vm112_vm2, %vm113_vm1  ;;  %v1045_v34 = vpop.eup %1044 }
  0x95   :  { %v109_v23 = vsub.f32 1.0, %v108_v22  ;;  %v1251_v35 = vadd.f32 1.0, %v1045_v34 }
  0x97   :  { %v110_v25 = vmul.f32 %v1041_v20, %v109_v23  ;;  %1046 = vrcp.f32 %v1251_v35  ;;  %v133_v4 = vand.u32 2147483648, %v1251_v35  ;;  %vm127_vm6 = vweird.f32 %v1251_v35 }
  0x98   :  { %v131_v7 = vand.u32 2147483647, %v1251_v35 }
  0x99   :  { %v111_v27 = vadd.f32 %v1041_v20, %v110_v25  ;;  %v134_v9 = vor.u32 1.1754944e-38, %v133_v4 }
  0x9a   :  { %vm132_vm8 = vcmp.eq.f32.partialorder %v131_v7, 8.507059e+37 }
  0x9b   :  { %v115_v29 = vsel %vm114_vm3, %v1041_v20, %v111_v27 }
  0x9c   :  { %v120_v31 = vsel %vm117_vm4, %v119_v28, %v115_v29 }
  0x9d   :  { %v139_v32 = vmul.f32 %v1043_v30, %v120_v31  ;;  %v1047_v46 = vpop.eup %1046  ;;  %v138_v0 = vmul.f32 0.0, %v120_v31 }
  0x9e   :  { %v123_v53 = vmul.f32 %v1047_v46, %v1251_v35  ;;  %vm128_vm5 = vweird.f32 %v1047_v46 }
  0x9f   :  { %141 = vrot.lane.b32.xlu0 %v139_v32, %s1177_s1  ;;  %vm129_vm7 = vmor %vm127_vm6, %vm128_vm5 }
  0xa0   :  { %v124_v60 = vsub.f32 1.0, %v123_v53 }
  0xa2   :  { %v125_v63 = vmul.f32 %v1047_v46, %v124_v60 }
  0xa4   :  { %v126_v3 = vadd.f32 %v1047_v46, %v125_v63 }
  0xa6   :  { %v130_v8 = vsel %vm129_vm7, %v1047_v46, %v126_v3 }
  0xa7   :  { %v135_v12 = vsel %vm132_vm8, %v134_v9, %v130_v8 }
 0x111   :  { %v142_v1 = vpop.permute.xlu0 %141 }
 0x112   :  { %v1287_v2 = vadd.f32 %v142_v1, %v138_v0 }
 0x114   :  { %1048 = vtanh.f32 %v1287_v2  ;;  %v152_v36 = vmul.f32 %v149_v14, %v1287_v2 }
 0x116   :  { %v275_v42 = vrot.slane %v152_v36, 6 }
 0x11a   :  { %v1049_v10 = vpop.eup %1048 }
 0x11b   :  { %v146_v13 = vmul.f32 %v1049_v10, %v135_v12 }
 0x11d   :  { %v151_v15 = vmul.f32 %v149_v14, %v146_v13 }
 0x11f   :  { %v153_v17 = vpack.c.bf16 %v151_v15, %v151_v15 }
 0x121   :  { %155 = vrot.lane.b32.xlu1 %v153_v17, %s1177_s1 }
 0x193   :  { %v156_v18 = vpop.permute.xlu1 %155 }
 0x194   :  { %986 = vmatmul.msk.bf16.vlgmr.msra.gmra.mxu0 %vm197_vm9, %v156_v18  ;;  %987 = vmatmul.msk.bf16.vlgmr.msra.gmra.mxu1 %vm197_vm9, %v156_v18 }
 0x195   :  { %570 = vmatpush.bf16.msra.mxu0 %v1254_v39  ;;  %583 = vmatpush.bf16.msra.mxu1 %v1256_v43 }
 0x199   :  { %571 = vmatpush.bf16.msra.mxu0 %v1259_v47  ;;  %584 = vmatpush.bf16.msra.mxu1 %v1263_v48 }
 0x19d   :  { %572 = vmatpush.bf16.msra.mxu0 %v1268_v54  ;;  %585 = vmatpush.bf16.msra.mxu1 %v1272_v55 }
 0x1a1   :  { %573 = vmatpush.bf16.msra.mxu0 %v1276_v61  ;;  %586 = vmatpush.bf16.msra.mxu1 %v1280_v62 }
 0x211   :  { %v210_v20 = vpop.f32.mrf.mxu0  ;;  %v223_v22 = vpop.f32.mrf.mxu1 }
 0x212   :  { %v229_v23 = vrot.slane %v210_v20, 6  ;;  %v230_v30 = vrot.slane %v223_v22, 6 }
 0x214   :  { %v233_v24 = vadd.f32 %v229_v23, %v1236_v11  ;;  %v234_v32 = vadd.f32 %v230_v30, %v1246_v21 }
 0x216   :  { %v988_v25 = vmul.f32 -1.442695, %v233_v24  ;;  %v989_v51 = vmul.f32 -1.442695, %v234_v32 }
 0x218   :  { %1050 = vpow2.f32 %v988_v25 }
 0x219   :  { %v212_v26 = vpop.f32.mrf.mxu0  ;;  %v225_v27 = vpop.f32.mrf.mxu1 }
 0x21e   :  { %v1051_v28 = vpop.eup %1050 }
 0x21f   :  { %v241_v29 = vadd.f32 1.0, %v1051_v28 }
 0x221   :  { %1052 = vrcp.f32 %v241_v29  ;;  %v254_v35 = vand.u32 2147483648, %v241_v29  ;;  %v252_v38 = vand.u32 2147483647, %v241_v29  ;;  %vm248_vm11 = vweird.f32 %v241_v29 }
 0x222   :  { %1054 = vtanh.f32 %v234_v32 }
 0x223   :  { %v255_v41 = vor.u32 1.1754944e-38, %v254_v35  ;;  %vm253_vm13 = vcmp.eq.f32.partialorder %v252_v38, 8.507059e+37  ;;  %1056 = vpow2.f32 %v989_v51 }
 0x227   :  { %v1053_v31 = vpop.eup %1052 }
 0x228   :  { %v244_v33 = vmul.f32 %v1053_v31, %v241_v29  ;;  %vm249_vm10 = vweird.f32 %v1053_v31  ;;  %v1055_v45 = vpop.eup %1054 }
 0x229   :  { %vm250_vm12 = vmor %vm248_vm11, %vm249_vm10  ;;  %v1057_v52 = vpop.eup %1056 }
 0x22a   :  { %v245_v34 = vsub.f32 1.0, %v244_v33  ;;  %v242_v53 = vadd.f32 1.0, %v1057_v52 }
 0x22c   :  { %v246_v37 = vmul.f32 %v1053_v31, %v245_v34  ;;  %1058 = vrcp.f32 %v242_v53  ;;  %v269_v1 = vand.u32 2147483648, %v242_v53  ;;  %vm263_vm15 = vweird.f32 %v242_v53 }
 0x22d   :  { %v267_v2 = vand.u32 2147483647, %v242_v53 }
 0x22e   :  { %v247_v40 = vadd.f32 %v1053_v31, %v246_v37  ;;  %v270_v4 = vor.u32 1.1754944e-38, %v269_v1 }
 0x22f   :  { %vm268_vm1 = vcmp.eq.f32.partialorder %v267_v2, 8.507059e+37 }
 0x230   :  { %v251_v44 = vsel %vm250_vm12, %v1053_v31, %v247_v40 }
 0x231   :  { %v256_v46 = vsel %vm253_vm13, %v255_v41, %v251_v44 }
 0x232   :  { %v278_v49 = vmul.f32 %v1055_v45, %v256_v46  ;;  %v277_v50 = vmul.f32 %v275_v42, %v256_v46  ;;  %v1059_v56 = vpop.eup %1058 }
 0x233   :  { %v259_v57 = vmul.f32 %v1059_v56, %v242_v53  ;;  %vm264_vm14 = vweird.f32 %v1059_v56 }
 0x234   :  { %280 = vrot.lane.b32.xlu2 %v278_v49, %s1177_s1  ;;  %vm265_vm0 = vmor %vm263_vm15, %vm264_vm14 }
 0x235   :  { %v260_v58 = vsub.f32 1.0, %v259_v57 }
 0x237   :  { %v261_v59 = vmul.f32 %v1059_v56, %v260_v58 }
 0x239   :  { %v262_v0 = vadd.f32 %v1059_v56, %v261_v59 }
 0x23b   :  { %v266_v3 = vsel %vm265_vm0, %v1059_v56, %v262_v0 }
 0x23c   :  { %v271_v8 = vsel %vm268_vm1, %v270_v4, %v266_v3 }
 0x28e   :  { %v281_v60 = vpop.permute.xlu2 %280 }
 0x28f   :  { %v283_v63 = vadd.f32 %v281_v60, %v277_v50 }
 0x291   :  { %1060 = vtanh.f32 %v283_v63  ;;  %v368_v36 = vrot.slane %v283_v63, 6 }
 0x297   :  { %v1061_v7 = vpop.eup %1060 }
 0x298   :  { %v285_v9 = vmul.f32 %v1061_v7, %v271_v8 }
 0x29a   :  { %v286_v10 = vpack.c.bf16 %v285_v9, %v285_v9 }
 0x29c   :  { %v288_v12 = vrot.slane %v286_v10, 1 }
 0x29e   :  { %289 = vrot.lane.b32.xlu2 %v288_v12, %s1177_s1 }
 0x2f8   :  { %v290_v13 = vpop.permute.xlu2 %289 }
 0x2f9   :  { %990 = vmatmul.msk.bf16.vlgmr.msra.gmra.mxu2 %vm197_vm9, %v290_v13  ;;  %991 = vmatmul.msk.bf16.vlgmr.msra.gmra.mxu3 %vm197_vm9, %v290_v13 }
 0x2fa   :  { %663 = vmatpush.bf16.msra.mxu2 %v1254_v39  ;;  %676 = vmatpush.bf16.msra.mxu3 %v1256_v43 }
 0x2fe   :  { %664 = vmatpush.bf16.msra.mxu2 %v1259_v47  ;;  %677 = vmatpush.bf16.msra.mxu3 %v1263_v48 }
 0x302   :  { %665 = vmatpush.bf16.msra.mxu2 %v1268_v54  ;;  %678 = vmatpush.bf16.msra.mxu3 %v1272_v55 }
 0x306   :  { %666 = vmatpush.bf16.msra.mxu2 %v1276_v61  ;;  %679 = vmatpush.bf16.msra.mxu3 %v1280_v62 }
 0x37c   :  { %v303_v14 = vpop.f32.mrf.mxu2  ;;  %v316_v15 = vpop.f32.mrf.mxu3 }
 0x37d   :  { %v322_v17 = vrot.slane %v303_v14, 4  ;;  %v323_v26 = vrot.slane %v316_v15, 4 }
 0x37f   :  { %v326_v18 = vadd.f32 %v322_v17, %v1236_v11  ;;  %v327_v28 = vadd.f32 %v323_v26, %v1246_v21 }
 0x381   :  { %v992_v20 = vmul.f32 -1.442695, %v326_v18  ;;  %v993_v44 = vmul.f32 -1.442695, %v327_v28 }
 0x383   :  { %1062 = vpow2.f32 %v992_v20 }
 0x384   :  { %v305_v22 = vpop.f32.mrf.mxu2  ;;  %v318_v23 = vpop.f32.mrf.mxu3 }
 0x389   :  { %v1063_v24 = vpop.eup %1062 }
 0x38a   :  { %v334_v25 = vadd.f32 1.0, %v1063_v24 }
 0x38c   :  { %1064 = vrcp.f32 %v334_v25  ;;  %v347_v31 = vand.u32 2147483648, %v334_v25  ;;  %v345_v33 = vand.u32 2147483647, %v334_v25  ;;  %vm341_vm3 = vweird.f32 %v334_v25 }
 0x38d   :  { %1066 = vtanh.f32 %v327_v28 }
 0x38e   :  { %v348_v35 = vor.u32 1.1754944e-38, %v347_v31  ;;  %vm346_vm5 = vcmp.eq.f32.partialorder %v345_v33, 8.507059e+37  ;;  %1068 = vpow2.f32 %v993_v44 }
 0x392   :  { %v1065_v27 = vpop.eup %1064 }
 0x393   :  { %v337_v29 = vmul.f32 %v1065_v27, %v334_v25  ;;  %vm342_vm2 = vweird.f32 %v1065_v27  ;;  %v1067_v38 = vpop.eup %1066 }
 0x394   :  { %vm343_vm4 = vmor %vm341_vm3, %vm342_vm2  ;;  %v1069_v45 = vpop.eup %1068 }
 0x395   :  { %v338_v30 = vsub.f32 1.0, %v337_v29  ;;  %v335_v46 = vadd.f32 1.0, %v1069_v45 }
 0x397   :  { %v339_v32 = vmul.f32 %v1065_v27, %v338_v30  ;;  %1070 = vrcp.f32 %v335_v46  ;;  %v362_v58 = vand.u32 2147483648, %v335_v46  ;;  %vm356_vm7 = vweird.f32 %v335_v46 }
 0x398   :  { %v360_v59 = vand.u32 2147483647, %v335_v46 }
 0x399   :  { %v340_v34 = vadd.f32 %v1065_v27, %v339_v32  ;;  %v363_v63 = vor.u32 1.1754944e-38, %v362_v58 }
 0x39a   :  { %vm361_vm10 = vcmp.eq.f32.partialorder %v360_v59, 8.507059e+37 }
 0x39b   :  { %v344_v37 = vsel %vm343_vm4, %v1065_v27, %v340_v34 }
 0x39c   :  { %v349_v40 = vsel %vm346_vm5, %v348_v35, %v344_v37 }
 0x39d   :  { %v371_v41 = vmul.f32 %v1067_v38, %v349_v40  ;;  %v370_v42 = vmul.f32 %v368_v36, %v349_v40  ;;  %v1071_v49 = vpop.eup %1070 }
 0x39e   :  { %v352_v50 = vmul.f32 %v1071_v49, %v335_v46  ;;  %vm357_vm6 = vweird.f32 %v1071_v49 }
 0x39f   :  { %373 = vrot.lane.b32.xlu0 %v371_v41, %s1177_s1  ;;  %vm358_vm8 = vmor %vm356_vm7, %vm357_vm6 }
 0x3a0   :  { %v353_v51 = vsub.f32 1.0, %v352_v50 }
 0x3a2   :  { %v354_v52 = vmul.f32 %v1071_v49, %v353_v51 }
 0x3a4   :  { %v355_v57 = vadd.f32 %v1071_v49, %v354_v52 }
 0x3a6   :  { %v359_v60 = vsel %vm358_vm8, %v1071_v49, %v355_v57 }
 0x3a7   :  { %v364_v1 = vsel %vm361_vm10, %v363_v63, %v359_v60  ;;  %v53_v60 = vld [vmem:[%s1416_s0 + $0x8] sm:$0xff] }
 0x411   :  { %v374_v53 = vpop.permute.xlu0 %373 }
 0x412   :  { %v376_v56 = vadd.f32 %v374_v53, %v370_v42 }
 0x414   :  { %1072 = vtanh.f32 %v376_v56  ;;  %v461_v30 = vrot.slane %v376_v56, 6 }
 0x41a   :  { %v1073_v0 = vpop.eup %1072 }
 0x41b   :  { %v378_v2 = vmul.f32 %v1073_v0, %v364_v1 }
 0x41d   :  { %v379_v3 = vpack.c.bf16 %v378_v2, %v378_v2 }
 0x41f   :  { %v381_v4 = vrot.slane %v379_v3, 2 }
 0x421   :  { %382 = vrot.lane.b32.xlu1 %v381_v4, %s1177_s1 }
 0x429   :  { %62 = vperm.xlu1 %1035, %v53_v60  }
 0x493   :  { %v383_v7 = vpop.permute.xlu1 %382 }
 0x494   :  { %994 = vmatmul.msk.bf16.vlgmr.msrb.gmra.mxu0 %vm197_vm9, %v383_v7  ;;  %995 = vmatmul.msk.bf16.vlgmr.msrb.gmra.mxu1 %vm197_vm9, %v383_v7 }
 0x495   :  { %756 = vmatpush.bf16.msrb.mxu0 %v1254_v39  ;;  %769 = vmatpush.bf16.msrb.mxu1 %v1256_v43 }
 0x499   :  { %757 = vmatpush.bf16.msrb.mxu0 %v1259_v47  ;;  %770 = vmatpush.bf16.msrb.mxu1 %v1263_v48 }
 0x49b   :  { %v63_v0 = vpop.permute.xlu1 %62 }
 0x49c   :  { %v77_v1 = vmul.f32 %v1230_v5, %v63_v0 }
 0x49d   :  { %758 = vmatpush.bf16.msrb.mxu0 %v1268_v54  ;;  %771 = vmatpush.bf16.msrb.mxu1 %v1272_v55 }
 0x49e   :  { %v1371_v2 = vadd.f32 %v1232_v6, %v77_v1 }
 0x4a1   :  { %759 = vmatpush.bf16.msrb.mxu0 %v1276_v61  ;;  %772 = vmatpush.bf16.msrb.mxu1 %v1280_v62 }
 0x511   :  { %v396_v8 = vpop.f32.mrf.mxu0  ;;  %v409_v9 = vpop.f32.mrf.mxu1 }
 0x512   :  { %v415_v10 = vrot.slane %v396_v8, 2  ;;  %v416_v20 = vrot.slane %v409_v9, 2 }
 0x514   :  { %v419_v12 = vadd.f32 %v415_v10, %v1236_v11  ;;  %v420_v23 = vadd.f32 %v416_v20, %v1246_v21 }
 0x516   :  { %v996_v13 = vmul.f32 -1.442695, %v419_v12  ;;  %v997_v21 = vmul.f32 -1.442695, %v420_v23 }
 0x518   :  { %1074 = vpow2.f32 %v996_v13 }
 0x519   :  { %v398_v14 = vpop.f32.mrf.mxu0  ;;  %v411_v15 = vpop.f32.mrf.mxu1 }
 0x51e   :  { %v1075_v17 = vpop.eup %1074 }
 0x51f   :  { %v427_v18 = vadd.f32 1.0, %v1075_v17 }
 0x521   :  { %1076 = vrcp.f32 %v427_v18  ;;  %v440_v26 = vand.u32 2147483648, %v427_v18  ;;  %v438_v28 = vand.u32 2147483647, %v427_v18  ;;  %vm434_vm12 = vweird.f32 %v427_v18 }
 0x522   :  { %1078 = vtanh.f32 %v420_v23 }
 0x523   :  { %v441_v11 = vor.u32 1.1754944e-38, %v440_v26  ;;  %vm439_vm14 = vcmp.eq.f32.partialorder %v438_v28, 8.507059e+37  ;;  %1080 = vpow2.f32 %v997_v21 }
 0x527   :  { %v1077_v22 = vpop.eup %1076 }
 0x528   :  { %v430_v24 = vmul.f32 %v1077_v22, %v427_v18  ;;  %vm435_vm11 = vweird.f32 %v1077_v22  ;;  %v1079_v32 = vpop.eup %1078 }
 0x529   :  { %vm436_vm13 = vmor %vm434_vm12, %vm435_vm11  ;;  %v1081_v36 = vpop.eup %1080 }
 0x52a   :  { %v431_v25 = vsub.f32 1.0, %v430_v24  ;;  %v428_v37 = vadd.f32 1.0, %v1081_v36 }
 0x52c   :  { %v432_v27 = vmul.f32 %v1077_v22, %v431_v25  ;;  %1082 = vrcp.f32 %v428_v37  ;;  %v455_v49 = vand.u32 2147483648, %v428_v37  ;;  %vm449_vm0 = vweird.f32 %v428_v37 }
 0x52d   :  { %v453_v50 = vand.u32 2147483647, %v428_v37 }
 0x52e   :  { %v433_v29 = vadd.f32 %v1077_v22, %v432_v27  ;;  %v456_v52 = vor.u32 1.1754944e-38, %v455_v49 }
 0x52f   :  { %vm454_vm2 = vcmp.eq.f32.partialorder %v453_v50, 8.507059e+37 }
 0x530   :  { %v437_v31 = vsel %vm436_vm13, %v1077_v22, %v433_v29 }
 0x531   :  { %v442_v33 = vsel %vm439_vm14, %v441_v11, %v437_v31 }
 0x532   :  { %v464_v34 = vmul.f32 %v1079_v32, %v442_v33  ;;  %v463_v35 = vmul.f32 %v461_v30, %v442_v33  ;;  %v1083_v38 = vpop.eup %1082 }
 0x533   :  { %v445_v40 = vmul.f32 %v1083_v38, %v428_v37  ;;  %vm450_vm15 = vweird.f32 %v1083_v38 }
 0x534   :  { %466 = vrot.lane.b32.xlu2 %v464_v34, %s1177_s1  ;;  %vm451_vm1 = vmor %vm449_vm0, %vm450_vm15 }
 0x535   :  { %v446_v41 = vsub.f32 1.0, %v445_v40 }
 0x537   :  { %v447_v42 = vmul.f32 %v1083_v38, %v446_v41 }
 0x539   :  { %v448_v46 = vadd.f32 %v1083_v38, %v447_v42 }
 0x53b   :  { %v452_v51 = vsel %vm451_vm1, %v1083_v38, %v448_v46 }
 0x53c   :  { %v457_v56 = vsel %vm454_vm2, %v456_v52, %v452_v51 }
 0x58e   :  { %v467_v44 = vpop.permute.xlu2 %466 }
 0x58f   :  { %v1352_v45 = vadd.f32 %v467_v44, %v463_v35 }
 0x591   :  { %1084 = vtanh.f32 %v1352_v45  ;;  %v548_v18 = vrot.slane %v1352_v45, 6 }
 0x597   :  { %v1085_v53 = vpop.eup %1084 }
 0x598   :  { %v471_v57 = vmul.f32 %v1085_v53, %v457_v56 }
 0x59a   :  { %v472_v58 = vpack.c.bf16 %v471_v57, %v471_v57 }
 0x59c   :  { %v474_v59 = vrot.slane %v472_v58, 3 }
 0x59e   :  { %475 = vrot.lane.b32.xlu0 %v474_v59, %s1177_s1 }
 0x610   :  { %v476_v63 = vpop.permute.xlu0 %475 }
 0x611   :  { %998 = vmatmul.msk.bf16.vlgmr.msrb.gmra.mxu2 %vm197_vm9, %v476_v63  ;;  %999 = vmatmul.msk.bf16.vlgmr.msrb.gmra.mxu3 %vm197_vm9, %v476_v63 }
 0x612   :  { %849 = vmatpush.bf16.msrb.mxu2 %v1254_v39  ;;  %862 = vmatpush.bf16.msrb.mxu3 %v1256_v43 }
 0x616   :  { %850 = vmatpush.bf16.msrb.mxu2 %v1259_v47  ;;  %863 = vmatpush.bf16.msrb.mxu3 %v1263_v48 }
 0x61a   :  { %851 = vmatpush.bf16.msrb.mxu2 %v1268_v54  ;;  %864 = vmatpush.bf16.msrb.mxu3 %v1272_v55  ;;  %v78_v55 = vmul.f32 %v1240_v16, %v63_v0 }
 0x61e   :  { %852 = vmatpush.bf16.msrb.mxu2 %v1276_v61  ;;  %865 = vmatpush.bf16.msrb.mxu3 %v1280_v62  ;;  %v1376_v62 = vadd.f32 %v1243_v19, %v78_v55 }
 0x694   :  { %v489_v39 = vpop.f32.mrf.mxu2  ;;  %v502_v43 = vpop.f32.mrf.mxu3 }
 0x695   :  { %v506_v47 = vadd.f32 %v489_v39, %v1371_v2  ;;  %v507_v8 = vadd.f32 %v502_v43, %v1376_v62 }
 0x697   :  { %v1000_v3 = vmul.f32 -1.442695, %v506_v47  ;;  %v1001_v26 = vmul.f32 -1.442695, %v507_v8 }
 0x699   :  { %1086 = vpow2.f32 %v1000_v3 }
 0x69c   :  { %v491_v48 = vpop.f32.mrf.mxu2  ;;  %v504_v54 = vpop.f32.mrf.mxu3 }
 0x69f   :  { %v1087_v4 = vpop.eup %1086 }
 0x6a0   :  { %v514_v61 = vadd.f32 1.0, %v1087_v4 }
 0x6a2   :  { %1088 = vrcp.f32 %v514_v61  ;;  %v527_v12 = vand.u32 2147483648, %v514_v61  ;;  %v525_v14 = vand.u32 2147483647, %v514_v61  ;;  %vm521_vm4 = vweird.f32 %v514_v61 }
 0x6a3   :  { %1090 = vtanh.f32 %v507_v8 }
 0x6a4   :  { %v528_v17 = vor.u32 1.1754944e-38, %v527_v12  ;;  %vm526_vm6 = vcmp.eq.f32.partialorder %v525_v14, 8.507059e+37  ;;  %1092 = vpow2.f32 %v1001_v26 }
 0x6a8   :  { %v1089_v7 = vpop.eup %1088 }
 0x6a9   :  { %v517_v9 = vmul.f32 %v1089_v7, %v514_v61  ;;  %vm522_vm3 = vweird.f32 %v1089_v7  ;;  %v1091_v22 = vpop.eup %1090 }
 0x6aa   :  { %vm523_vm5 = vmor %vm521_vm4, %vm522_vm3  ;;  %v1093_v27 = vpop.eup %1092 }
 0x6ab   :  { %v518_v10 = vsub.f32 1.0, %v517_v9  ;;  %v515_v28 = vadd.f32 1.0, %v1093_v27 }
 0x6ad   :  { %v519_v13 = vmul.f32 %v1089_v7, %v518_v10  ;;  %1094 = vrcp.f32 %v515_v28  ;;  %v542_v35 = vand.u32 2147483648, %v515_v28  ;;  %vm536_vm8 = vweird.f32 %v515_v28 }
 0x6ae   :  { %v540_v21 = vand.u32 2147483647, %v515_v28 }
 0x6af   :  { %v520_v15 = vadd.f32 %v1089_v7, %v519_v13  ;;  %v543_v37 = vor.u32 1.1754944e-38, %v542_v35 }
 0x6b0   :  { %vm541_vm11 = vcmp.eq.f32.partialorder %v540_v21, 8.507059e+37 }
 0x6b1   :  { %v524_v20 = vsel %vm523_vm5, %v1089_v7, %v520_v15 }
 0x6b2   :  { %v529_v23 = vsel %vm526_vm6, %v528_v17, %v524_v20 }
 0x6b3   :  { %v551_v24 = vmul.f32 %v1091_v22, %v529_v23  ;;  %v550_v25 = vmul.f32 %v548_v18, %v529_v23  ;;  %v1095_v29 = vpop.eup %1094 }
 0x6b4   :  { %v532_v11 = vmul.f32 %v1095_v29, %v515_v28  ;;  %vm537_vm7 = vweird.f32 %v1095_v29 }
 0x6b5   :  { %553 = vrot.lane.b32.xlu2 %v551_v24, %s1177_s1  ;;  %vm538_vm10 = vmor %vm536_vm8, %vm537_vm7 }
 0x6b6   :  { %v533_v30 = vsub.f32 1.0, %v532_v11 }
 0x6b8   :  { %v534_v31 = vmul.f32 %v1095_v29, %v533_v30 }
 0x6ba   :  { %v535_v34 = vadd.f32 %v1095_v29, %v534_v31 }
 0x6bc   :  { %v539_v36 = vsel %vm538_vm10, %v1095_v29, %v535_v34 }
 0x6bd   :  { %v544_v40 = vsel %vm541_vm11, %v543_v37, %v539_v36 }
 0x70f   :  { %v554_v32 = vpop.permute.xlu2 %553 }
 0x710   :  { %v556_v33 = vadd.f32 %v554_v32, %v550_v25 }
 0x712   :  { %1096 = vtanh.f32 %v556_v33  ;;  %v640_v48 = vrot.slane %v556_v33, 6 }
 0x718   :  { %v1097_v38 = vpop.eup %1096 }
 0x719   :  { %v558_v41 = vmul.f32 %v1097_v38, %v544_v40 }
 0x71b   :  { %v559_v42 = vpack.c.bf16 %v558_v41, %v558_v41 }
 0x71d   :  { %561 = vrot.lane.b32.xlu0 %v559_v42, %s1177_s1 }
 0x78f   :  { %v562_v44 = vpop.permute.xlu0 %561 }
 0x790   :  { %1002 = vmatmul.msk.bf16.vlgmr.msra.gmra.mxu0 %vm197_vm9, %v562_v44  ;;  %1003 = vmatmul.msk.bf16.vlgmr.msra.gmra.mxu1 %vm197_vm9, %v562_v44 }
 0x80d   :  { %v575_v45 = vpop.f32.mrf.mxu0  ;;  %v588_v46 = vpop.f32.mrf.mxu1 }
 0x80e   :  { %v594_v49 = vrot.slane %v575_v45, 6  ;;  %v595_v58 = vrot.slane %v588_v46, 6 }
 0x810   :  { %v598_v50 = vadd.f32 %v594_v49, %v1371_v2  ;;  %v599_v60 = vadd.f32 %v595_v58, %v1376_v62 }
 0x812   :  { %v1004_v51 = vmul.f32 -1.442695, %v598_v50  ;;  %v1005_v8 = vmul.f32 -1.442695, %v599_v60 }
 0x814   :  { %1098 = vpow2.f32 %v1004_v51 }
 0x815   :  { %v577_v52 = vpop.f32.mrf.mxu0  ;;  %v590_v53 = vpop.f32.mrf.mxu1 }
 0x81a   :  { %v1099_v56 = vpop.eup %1098 }
 0x81b   :  { %v606_v57 = vadd.f32 1.0, %v1099_v56 }
 0x81d   :  { %1100 = vrcp.f32 %v606_v57  ;;  %v619_v1 = vand.u32 2147483648, %v606_v57  ;;  %v617_v43 = vand.u32 2147483647, %v606_v57  ;;  %vm613_vm13 = vweird.f32 %v606_v57 }
 0x81e   :  { %1102 = vtanh.f32 %v599_v60 }
 0x81f   :  { %v620_v3 = vor.u32 1.1754944e-38, %v619_v1  ;;  %vm618_vm15 = vcmp.eq.f32.partialorder %v617_v43, 8.507059e+37  ;;  %1104 = vpow2.f32 %v1005_v8 }
 0x823   :  { %v1101_v59 = vpop.eup %1100 }
 0x824   :  { %v609_v63 = vmul.f32 %v1101_v59, %v606_v57  ;;  %vm614_vm12 = vweird.f32 %v1101_v59  ;;  %v1103_v4 = vpop.eup %1102 }
 0x825   :  { %vm615_vm14 = vmor %vm613_vm13, %vm614_vm12  ;;  %v1105_v9 = vpop.eup %1104 }
 0x826   :  { %v610_v0 = vsub.f32 1.0, %v609_v63  ;;  %v607_v10 = vadd.f32 1.0, %v1105_v9 }
 0x828   :  { %v611_v39 = vmul.f32 %v1101_v59, %v610_v0  ;;  %1106 = vrcp.f32 %v607_v10  ;;  %v634_v22 = vand.u32 2147483648, %v607_v10  ;;  %vm628_vm1 = vweird.f32 %v607_v10 }
 0x829   :  { %v632_v23 = vand.u32 2147483647, %v607_v10 }
 0x82a   :  { %v612_v47 = vadd.f32 %v1101_v59, %v611_v39  ;;  %v635_v25 = vor.u32 1.1754944e-38, %v634_v22 }
 0x82b   :  { %vm633_vm3 = vcmp.eq.f32.partialorder %v632_v23, 8.507059e+37 }
 0x82c   :  { %v616_v54 = vsel %vm615_vm14, %v1101_v59, %v612_v47 }
 0x82d   :  { %v621_v55 = vsel %vm618_vm15, %v620_v3, %v616_v54 }
 0x82e   :  { %v643_v61 = vmul.f32 %v1103_v4, %v621_v55  ;;  %v642_v7 = vmul.f32 %v640_v48, %v621_v55  ;;  %v1107_v12 = vpop.eup %1106 }
 0x82f   :  { %v624_v13 = vmul.f32 %v1107_v12, %v607_v10  ;;  %vm629_vm0 = vweird.f32 %v1107_v12 }
 0x830   :  { %645 = vrot.lane.b32.xlu1 %v643_v61, %s1177_s1  ;;  %vm630_vm2 = vmor %vm628_vm1, %vm629_vm0 }
 0x831   :  { %v625_v14 = vsub.f32 1.0, %v624_v13 }
 0x833   :  { %v626_v15 = vmul.f32 %v1107_v12, %v625_v14 }
 0x835   :  { %v627_v20 = vadd.f32 %v1107_v12, %v626_v15  ;;  %v54_v15 = vld [vmem:[%s1416_s0 + $0x10] sm:$0x3] }
 0x837   :  { %v631_v24 = vsel %vm630_vm2, %v1107_v12, %v627_v20 }
 0x838   :  { %v636_v27 = vsel %vm633_vm3, %v635_v25, %v631_v24 }
 0x8a2   :  { %v646_v17 = vpop.permute.xlu1 %645 }
 0x8a3   :  { %v648_v18 = vadd.f32 %v646_v17, %v642_v7 }
 0x8a5   :  { %1108 = vtanh.f32 %v648_v18  ;;  %v733_v53 = vrot.slane %v648_v18, 6 }
 0x8ab   :  { %v1109_v26 = vpop.eup %1108 }
 0x8ac   :  { %v650_v28 = vmul.f32 %v1109_v26, %v636_v27 }
 0x8ae   :  { %v651_v29 = vpack.c.bf16 %v650_v28, %v650_v28 }
 0x8b0   :  { %v653_v11 = vrot.slane %v651_v29, 1 }
 0x8b2   :  { %654 = vrot.lane.b32.xlu2 %v653_v11, %s1177_s1 }
 0x90c   :  { %v655_v30 = vpop.permute.xlu2 %654 }
 0x90d   :  { %1006 = vmatmul.msk.bf16.vlgmr.msra.gmra.mxu2 %vm197_vm9, %v655_v30  ;;  %1007 = vmatmul.msk.bf16.vlgmr.msra.gmra.mxu3 %vm197_vm9, %v655_v30 }
 0x990   :  { %v668_v31 = vpop.f32.mrf.mxu2  ;;  %v681_v32 = vpop.f32.mrf.mxu3 }
 0x991   :  { %v687_v33 = vrot.slane %v668_v31, 4  ;;  %v688_v40 = vrot.slane %v681_v32, 4 }
 0x993   :  { %v691_v34 = vadd.f32 %v687_v33, %v1371_v2  ;;  %v692_v42 = vadd.f32 %v688_v40, %v1376_v62 }
 0x995   :  { %v1008_v35 = vmul.f32 -1.442695, %v691_v34  ;;  %v1009_v63 = vmul.f32 -1.442695, %v692_v42 }
 0x997   :  { %1110 = vpow2.f32 %v1008_v35 }
 0x998   :  { %v670_v21 = vpop.f32.mrf.mxu2  ;;  %v683_v36 = vpop.f32.mrf.mxu3 }
 0x99d   :  { %v1111_v37 = vpop.eup %1110 }
 0x99e   :  { %v699_v38 = vadd.f32 1.0, %v1111_v37 }
 0x9a0   :  { %1112 = vrcp.f32 %v699_v38  ;;  %v712_v46 = vand.u32 2147483648, %v699_v38  ;;  %v710_v50 = vand.u32 2147483647, %v699_v38  ;;  %vm706_vm5 = vweird.f32 %v699_v38 }
 0x9a1   :  { %1114 = vtanh.f32 %v692_v42 }
 0x9a2   :  { %v713_v52 = vor.u32 1.1754944e-38, %v712_v46  ;;  %vm711_vm7 = vcmp.eq.f32.partialorder %v710_v50, 8.507059e+37  ;;  %1116 = vpow2.f32 %v1009_v63 }
 0x9a6   :  { %v1113_v41 = vpop.eup %1112 }
 0x9a7   :  { %v702_v44 = vmul.f32 %v1113_v41, %v699_v38  ;;  %vm707_vm4 = vweird.f32 %v1113_v41  ;;  %v1115_v57 = vpop.eup %1114 }
 0x9a8   :  { %vm708_vm6 = vmor %vm706_vm5, %vm707_vm4  ;;  %v1117_v0 = vpop.eup %1116 }
 0x9a9   :  { %v703_v45 = vsub.f32 1.0, %v702_v44  ;;  %v700_v1 = vadd.f32 1.0, %v1117_v0 }
 0x9ab   :  { %v704_v49 = vmul.f32 %v1113_v41, %v703_v45  ;;  %1118 = vrcp.f32 %v700_v1  ;;  %v727_v55 = vand.u32 2147483648, %v700_v1  ;;  %vm721_vm10 = vweird.f32 %v700_v1 }
 0x9ac   :  { %v725_v61 = vand.u32 2147483647, %v700_v1 }
 0x9ad   :  { %v705_v51 = vadd.f32 %v1113_v41, %v704_v49  ;;  %v728_v8 = vor.u32 1.1754944e-38, %v727_v55 }
 0x9ae   :  { %vm726_vm12 = vcmp.eq.f32.partialorder %v725_v61, 8.507059e+37 }
 0x9af   :  { %v709_v56 = vsel %vm708_vm6, %v1113_v41, %v705_v51 }
 0x9b0   :  { %v714_v58 = vsel %vm711_vm7, %v713_v52, %v709_v56 }
 0x9b1   :  { %v736_v59 = vmul.f32 %v1115_v57, %v714_v58  ;;  %v735_v60 = vmul.f32 %v733_v53, %v714_v58  ;;  %v1119_v39 = vpop.eup %1118 }
 0x9b2   :  { %v717_v43 = vmul.f32 %v1119_v39, %v700_v1  ;;  %vm722_vm8 = vweird.f32 %v1119_v39 }
 0x9b3   :  { %738 = vrot.lane.b32.xlu0 %v736_v59, %s1177_s1  ;;  %vm723_vm11 = vmor %vm721_vm10, %vm722_vm8 }
 0x9b4   :  { %v718_v47 = vsub.f32 1.0, %v717_v43 }
 0x9b6   :  { %v719_v3 = vmul.f32 %v1119_v39, %v718_v47 }
 0x9b8   :  { %v720_v4 = vadd.f32 %v1119_v39, %v719_v3  ;;  %v1036_v3 = vld [vmem:[%s1420_s4] ss:$0 sm:$0xff]  ;;  %s1179_s4 = smov 32  }
 0x9ba   :  { %v724_v7 = vsel %vm723_vm11, %v1119_v39, %v720_v4 }
 0x9bb   :  { %v729_v10 = vsel %vm726_vm12, %v728_v8, %v724_v7 }
 0xa25   :  { %v739_v48 = vpop.permute.xlu0 %738 }
 0xa26   :  { %v741_v54 = vadd.f32 %v739_v48, %v735_v60 }
 0xa28   :  { %1120 = vtanh.f32 %v741_v54  ;;  %v826_v36 = vrot.slane %v741_v54, 6 }
 0xa2e   :  { %v1121_v9 = vpop.eup %1120 }
 0xa2f   :  { %v743_v12 = vmul.f32 %v1121_v9, %v729_v10 }
 0xa31   :  { %v744_v13 = vpack.c.bf16 %v743_v12, %v743_v12 }
 0xa33   :  { %v746_v14 = vrot.slane %v744_v13, 2 }
 0xa35   :  { %747 = vrot.lane.b32.xlu1 %v746_v14, %s1177_s1 }
 0xa3d   :  { %67 = vperm.xlu1 %1035, %v54_v15  }
 0xaa7   :  { %v748_v17 = vpop.permute.xlu1 %747 }
 0xaa8   :  { %1010 = vmatmul.msk.bf16.vlgmr.msrb.gmra.mxu0 %vm197_vm9, %v748_v17  ;;  %1011 = vmatmul.msk.bf16.vlgmr.msrb.gmra.mxu1 %vm197_vm9, %v748_v17 }
 0xaaf   :  { %v68_v48 = vpop.permute.xlu1 %67 }
 0xab0   :  { %v79_v54 = vmul.f32 %v1230_v5, %v68_v48  ;;  %v80_v14 = vmul.f32 %v1240_v16, %v68_v48 }
 0xab2   :  { %v90_v4 = vadd.f32 %v1232_v6, %v79_v54  ;;  %v91_v15 = vadd.f32 %v1243_v19, %v80_v14 }
 0xb25   :  { %v761_v18 = vpop.f32.mrf.mxu0  ;;  %v774_v20 = vpop.f32.mrf.mxu1 }
 0xb26   :  { %v780_v22 = vrot.slane %v761_v18, 2  ;;  %v781_v29 = vrot.slane %v774_v20, 2 }
 0xb28   :  { %v784_v23 = vadd.f32 %v780_v22, %v1371_v2  ;;  %v785_v30 = vadd.f32 %v781_v29, %v1376_v62 }
 0xb2a   :  { %v1012_v24 = vmul.f32 -1.442695, %v784_v23  ;;  %v1013_v62 = vmul.f32 -1.442695, %v785_v30 }
 0xb2c   :  { %1122 = vpow2.f32 %v1012_v24 }
 0xb2d   :  { %v763_v25 = vpop.f32.mrf.mxu0  ;;  %v776_v26 = vpop.f32.mrf.mxu1 }
 0xb32   :  { %v1123_v27 = vpop.eup %1122 }
 0xb33   :  { %v792_v28 = vadd.f32 1.0, %v1123_v27 }
 0xb35   :  { %1124 = vrcp.f32 %v792_v28  ;;  %v805_v33 = vand.u32 2147483648, %v792_v28  ;;  %v803_v35 = vand.u32 2147483647, %v792_v28  ;;  %vm799_vm14 = vweird.f32 %v792_v28 }
 0xb36   :  { %1126 = vtanh.f32 %v785_v30 }
 0xb37   :  { %v806_v2 = vor.u32 1.1754944e-38, %v805_v33  ;;  %vm804_vm0 = vcmp.eq.f32.partialorder %v803_v35, 8.507059e+37  ;;  %1128 = vpow2.f32 %v1013_v62 }
 0xb3b   :  { %v1125_v11 = vpop.eup %1124 }
 0xb3c   :  { %v795_v31 = vmul.f32 %v1125_v11, %v792_v28  ;;  %vm800_vm13 = vweird.f32 %v1125_v11  ;;  %v1127_v38 = vpop.eup %1126 }
 0xb3d   :  { %vm801_vm15 = vmor %vm799_vm14, %vm800_vm13  ;;  %v1129_v44 = vpop.eup %1128  ;;  %vm935_vm13 = vcmask 254976   ;;  %vm944_vm14 = vcmask 1024  }
 0xb3e   :  { %v796_v32 = vsub.f32 1.0, %v795_v31  ;;  %v793_v45 = vadd.f32 1.0, %v1129_v44 }
 0xb40   :  { %v797_v34 = vmul.f32 %v1125_v11, %v796_v32  ;;  %1130 = vrcp.f32 %v793_v45  ;;  %v820_v57 = vand.u32 2147483648, %v793_v45  ;;  %vm814_vm2 = vweird.f32 %v793_v45 }
 0xb41   :  { %v818_v58 = vand.u32 2147483647, %v793_v45 }
 0xb42   :  { %v798_v21 = vadd.f32 %v1125_v11, %v797_v34  ;;  %v821_v60 = vor.u32 1.1754944e-38, %v820_v57 }
 0xb43   :  { %vm819_vm4 = vcmp.eq.f32.partialorder %v818_v58, 8.507059e+37 }
 0xb44   :  { %v802_v37 = vsel %vm801_vm15, %v1125_v11, %v798_v21 }
 0xb45   :  { %v807_v40 = vsel %vm804_vm0, %v806_v2, %v802_v37 }
 0xb46   :  { %v829_v41 = vmul.f32 %v1127_v38, %v807_v40  ;;  %v828_v42 = vmul.f32 %v826_v36, %v807_v40  ;;  %v1131_v46 = vpop.eup %1130 }
 0xb47   :  { %v810_v49 = vmul.f32 %v1131_v46, %v793_v45  ;;  %vm815_vm1 = vweird.f32 %v1131_v46 }
 0xb48   :  { %831 = vrot.lane.b32.xlu2 %v829_v41, %s1177_s1  ;;  %vm816_vm3 = vmor %vm814_vm2, %vm815_vm1 }
 0xb49   :  { %v811_v50 = vsub.f32 1.0, %v810_v49 }
 0xb4b   :  { %v812_v51 = vmul.f32 %v1131_v46, %v811_v50 }
 0xb4d   :  { %v813_v56 = vadd.f32 %v1131_v46, %v812_v51  ;;  %v1037_v51 = vld [vmem:[#allocation2] ss:$0 sm:$0xff] }
 0xb4f   :  { %v817_v59 = vsel %vm816_vm3, %v1131_v46, %v813_v56 }
 0xb50   :  { %v822_v0 = vsel %vm819_vm4, %v821_v60, %v817_v59 }
 0xba2   :  { %v832_v52 = vpop.permute.xlu2 %831 }
 0xba3   :  { %v834_v53 = vadd.f32 %v832_v52, %v828_v42 }
 0xba5   :  { %1132 = vtanh.f32 %v834_v53  ;;  %v913_v26 = vrot.slane %v834_v53, 6 }
 0xbab   :  { %v1133_v63 = vpop.eup %1132 }
 0xbac   :  { %v836_v1 = vmul.f32 %v1133_v63, %v822_v0 }
 0xbae   :  { %v837_v39 = vpack.c.bf16 %v836_v1, %v836_v1 }
 0xbb0   :  { %v839_v43 = vrot.slane %v837_v39, 3 }
 0xbb2   :  { %840 = vrot.lane.b32.xlu0 %v839_v43, %s1177_s1 }
 0xbba   :  { %927 = vrot.lane.b32.xlu0 %v1036_v3, %s1178_s14 }
 0xc24   :  { %v841_v47 = vpop.permute.xlu0 %840 }
 0xc25   :  { %1014 = vmatmul.msk.bf16.vlgmr.msrb.gmra.mxu2 %vm197_vm9, %v841_v47  ;;  %1015 = vmatmul.msk.bf16.vlgmr.msrb.gmra.mxu3 %vm197_vm9, %v841_v47 }
 0xc2c   :  { %v928_v44 = vpop.permute.xlu0 %927 }
 0xca8   :  { %v854_v55 = vpop.f32.mrf.mxu2  ;;  %v867_v61 = vpop.f32.mrf.mxu3 }
 0xca9   :  { %v871_v7 = vadd.f32 %v854_v55, %v90_v4  ;;  %v872_v18 = vadd.f32 %v867_v61, %v91_v15 }
 0xcab   :  { %v1016_v8 = vmul.f32 -1.442695, %v871_v7  ;;  %v1017_v11 = vmul.f32 -1.442695, %v872_v18 }
 0xcad   :  { %1134 = vpow2.f32 %v1016_v8 }
 0xcb0   :  { %v856_v9 = vpop.f32.mrf.mxu2  ;;  %v869_v10 = vpop.f32.mrf.mxu3 }
 0xcb3   :  { %v1135_v12 = vpop.eup %1134 }
 0xcb4   :  { %v879_v13 = vadd.f32 1.0, %v1135_v12 }
 0xcb6   :  { %1136 = vrcp.f32 %v879_v13  ;;  %v892_v6 = vand.u32 2147483648, %v879_v13  ;;  %v890_v23 = vand.u32 2147483647, %v879_v13  ;;  %vm886_vm5 = vweird.f32 %v879_v13 }
 0xcb7   :  { %1138 = vtanh.f32 %v872_v18 }
 0xcb8   :  { %v893_v25 = vor.u32 1.1754944e-38, %v892_v6  ;;  %vm891_vm7 = vcmp.eq.f32.partialorder %v890_v23, 8.507059e+37  ;;  %1140 = vpow2.f32 %v1017_v11 }
 0xcbc   :  { %v1137_v17 = vpop.eup %1136 }
 0xcbd   :  { %v882_v20 = vmul.f32 %v1137_v17, %v879_v13  ;;  %vm887_vm9 = vweird.f32 %v1137_v17  ;;  %v1139_v16 = vpop.eup %1138 }
 0xcbe   :  { %vm888_vm6 = vmor %vm886_vm5, %vm887_vm9  ;;  %v1141_v30 = vpop.eup %1140 }
 0xcbf   :  { %v883_v5 = vsub.f32 1.0, %v882_v20  ;;  %v880_v31 = vadd.f32 1.0, %v1141_v30 }
 0xcc1   :  { %v884_v22 = vmul.f32 %v1137_v17, %v883_v5  ;;  %1142 = vrcp.f32 %v880_v31  ;;  %v907_v37 = vand.u32 2147483648, %v880_v31  ;;  %vm901_vm10 = vweird.f32 %v880_v31 }
 0xcc2   :  { %v905_v38 = vand.u32 2147483647, %v880_v31 }
 0xcc3   :  { %v885_v24 = vadd.f32 %v1137_v17, %v884_v22  ;;  %v908_v41 = vor.u32 1.1754944e-38, %v907_v37 }
 0xcc4   :  { %vm906_vm12 = vcmp.eq.f32.partialorder %v905_v38, 8.507059e+37 }
 0xcc5   :  { %v889_v27 = vsel %vm888_vm6, %v1137_v17, %v885_v24 }
 0xcc6   :  { %v894_v28 = vsel %vm891_vm7, %v893_v25, %v889_v27 }
 0xcc7   :  { %v916_v29 = vmul.f32 %v1139_v16, %v894_v28  ;;  %v915_v19 = vmul.f32 %v913_v26, %v894_v28  ;;  %v1143_v32 = vpop.eup %1142 }
 0xcc8   :  { %v897_v33 = vmul.f32 %v1143_v32, %v880_v31  ;;  %vm902_vm8 = vweird.f32 %v1143_v32 }
 0xcc9   :  { %918 = vrot.lane.b32.xlu2 %v916_v29, %s1177_s1  ;;  %vm903_vm11 = vmor %vm901_vm10, %vm902_vm8 }
 0xcca   :  { %v898_v34 = vsub.f32 1.0, %v897_v33 }
 0xccc   :  { %v899_v35 = vmul.f32 %v1143_v32, %v898_v34 }
 0xcce   :  { %v900_v36 = vadd.f32 %v1143_v32, %v899_v35 }
 0xcd0   :  { %v904_v40 = vsel %vm903_vm11, %v1143_v32, %v900_v36 }
 0xcd1   :  { %v909_v62 = vsel %vm906_vm12, %v908_v41, %v904_v40 }
 0xd23   :  { %v919_v21 = vpop.permute.xlu2 %918 }
 0xd24   :  { %v921_v2 = vadd.f32 %v919_v21, %v915_v19 }
 0xd26   :  { %1144 = vtanh.f32 %v921_v2 }
 0xd2c   :  { %v1145_v42 = vpop.eup %1144 }
 0xd2d   :  { %v923_v45 = vmul.f32 %v1145_v42, %v909_v62 }
 0xd2f   :  { %v930_v46 = vmul.f32 %v928_v44, %v923_v45 }
 0xd31   :  { %932 = vrot.lane.b32.xlu1 %v930_v46, %s1179_s4 }
 0xda3   :  { %v933_v49 = vpop.permute.xlu1 %932 }
 0xda4   :  { %v936_v50 = vsel %vm935_vm13, %v933_v49, 0.0 }
 0xda5   :  { %937 = vadd.xlane.f32.xlu2 %v936_v50 }
 0xe18   :  { %v938_v52 = vpop.xlane.xlu2 %937 }
 0xe19   :  { %v943_v53 = vadd.f32 %v1037_v51, %v938_v52 }
 0xe1b   :  { %945 = vst.msk [vmem:[%s1422_s6] sm:$0x3] %vm944_vm14, %v943_v53 }
 0xe1c   :  { %950 = vsyncpa [#allocation4], 1 }

</bundles_post_ra>
